<compile_context>
chip_gen: v6e
topology: v6e:2x2x1
jax: 0.10.0
libtpu: 0.0.40
codegen_flags: <defaults>
</compile_context>

<pallas_src>
import jax
import jax.numpy as jnp
from jax.experimental import pallas as pl
from jax.experimental.pallas import tpu as pltpu


def _round_up(x, m):
    return ((x + m - 1) // m) * m


def _generator_kernel(x_ref, w_ref, b_ref, o_ref, m_ref, l_ref):
    # x_ref: (tm, D)     bf16  -- row tile of activations
    # w_ref: (D, tv)     bf16  -- vocab tile of the projection weight
    # b_ref: (1, V_pad)  f32   -- full bias (constant index map -> loaded once)
    # o_ref: (tm, V_pad) f32   -- lane-dense output block, resident across j
    # m_ref, l_ref: (tm, 1) f32 -- online-softmax running max / sum-exp
    j = pl.program_id(1)
    nv = pl.num_programs(1)
    tv = w_ref.shape[1]

    @pl.when(j == 0)
    def _init():
        m_ref[...] = jnp.full_like(m_ref, -jnp.inf)
        l_ref[...] = jnp.zeros_like(l_ref)

    # MXU matmul: bf16 operands, f32 accumulation. All softmax math stays f32
    # (v5e VPU/EUP have no bf16 path).
    col = pl.multiple_of(j * tv, 128)
    logits = jnp.dot(x_ref[...], w_ref[...], preferred_element_type=jnp.float32)
    logits = logits + b_ref[:, pl.ds(col, tv)]

    # Lane-dense store of the raw logit slab (128-aligned column offset).
    o_ref[:, pl.ds(col, tv)] = logits

    # Online softmax stats: exp() lands on the EUP slot, overlapping the next
    # tile's vmatmul instead of piling into a final serial pass.
    m_prev = m_ref[...]
    tile_max = jnp.max(logits, axis=1, keepdims=True)
    m_new = jnp.maximum(m_prev, tile_max)
    l_ref[...] = l_ref[...] * jnp.exp(m_prev - m_new) + jnp.sum(
        jnp.exp(logits - m_new), axis=1, keepdims=True)
    m_ref[...] = m_new

    # After the last vocab tile the whole logit row is in VMEM and the
    # logsumexp is already known: finalize is just a broadcast subtract.
    @pl.when(j == nv - 1)
    def _finalize():
        logz = m_ref[...] + jnp.log(l_ref[...])
        o_ref[...] = o_ref[...] - logz


def generator_forward(x, w, b, *, tm=256, tv=512,
                      vmem_limit_bytes=64 * 1024 * 1024):
    """log_softmax(x @ w + b, axis=-1).

    x: (B, S, D), w: (D, V) (f32 or pre-cast bf16), b: (V,)
    -> (B, S, V) float32 log-probs.
    """
    B, S, D = x.shape
    V = w.shape[1]
    N = B * S

    # Pad vocab to a lane multiple (padded columns get -1e30 bias -> they never
    # affect the logsumexp and are sliced off at the end).
    V_pad = _round_up(V, 128)

    # Vocab tile: largest multiple of 128 dividing V_pad, capped at `tv`.
    tv = max(128, (min(tv, V_pad) // 128) * 128)
    while V_pad % tv != 0:
        tv -= 128
    nv = V_pad // tv

    # Row tile: multiple of 8, capped at the (rounded-up) row count, shrunk if
    # the resident footprint would blow the VMEM budget (v7x: 64 MiB / TC).
    tm = min(_round_up(tm, 8), _round_up(N, 8))

    def _footprint(tm_):
        return (2 * tm_ * V_pad * 4      # resident f32 output (double-buffered over i)
                + 2 * D * tv * 2         # weight tiles (bf16, double-buffered)
                + 2 * tm_ * D * 2        # activation tiles (bf16, double-buffered)
                + V_pad * 4              # full bias
                + 2 * tm_ * 4)           # online-softmax scratch

    while tm > 8 and _footprint(tm) > int(0.85 * vmem_limit_bytes):
        tm = _round_up(max(tm // 2, 8), 8)

    n_pad = _round_up(N, tm)

    # One-time casts / pads in the wrapper: bf16 matmul operands, f32 bias.
    # (Pass w already in bf16 to avoid re-casting the full weight every call.)
    x2 = x.reshape(N, D).astype(jnp.bfloat16)
    if n_pad != N:
        x2 = jnp.pad(x2, ((0, n_pad - N), (0, 0)))
    w_bf = w if w.dtype == jnp.bfloat16 else w.astype(jnp.bfloat16)
    b_f32 = b.astype(jnp.float32)
    if V_pad != V:
        w_bf = jnp.pad(w_bf, ((0, 0), (0, V_pad - V)))
        b_f32 = jnp.pad(b_f32, (0, V_pad - V), constant_values=-1e30)
    b2 = b_f32.reshape(1, V_pad)

    out = pl.pallas_call(
        _generator_kernel,
        out_shape=jax.ShapeDtypeStruct((n_pad, V_pad), jnp.float32),
        grid_spec=pltpu.PrefetchScalarGridSpec(
            num_scalar_prefetch=0,
            grid=(n_pad // tm, nv),                        # rows parallel, vocab last
            in_specs=[
                pl.BlockSpec((tm, D), lambda i, j: (i, 0)),       # activations
                pl.BlockSpec((D, tv), lambda i, j: (0, j)),       # weight, streamed over V
                pl.BlockSpec((1, V_pad), lambda i, j: (0, 0)),    # full bias, loaded once
            ],
            out_specs=pl.BlockSpec((tm, V_pad), lambda i, j: (i, 0)),
            scratch_shapes=[pltpu.VMEM((tm, 1), jnp.float32),     # running max
                            pltpu.VMEM((tm, 1), jnp.float32)],    # running sum-exp
        ),
        compiler_params=pltpu.CompilerParams(
            dimension_semantics=("parallel", "arbitrary"),
            vmem_limit_bytes=vmem_limit_bytes,
        ),
    )(x2, w_bf, b2)

    return out[:N, :V].reshape(B, S, V)


if __name__ == "__main__":
    # Small shapes implied by the module: Linear(d_model, vocab) + log_softmax
    batch, seq, d_model, vocab = 2, 8, 32, 128

    key = jax.random.PRNGKey(0)
    kx, kw, kb = jax.random.split(key, 3)

    # Deterministic parameter init (synthetic; mimics nn.Linear uniform init)
    bound = 1.0 / (d_model ** 0.5)
    w = jax.random.uniform(kw, (d_model, vocab), jnp.float32, -bound, bound)
    b = jax.random.uniform(kb, (vocab,), jnp.float32, -bound, bound)
    x = jax.random.normal(kx, (batch, seq, d_model), jnp.float32)

    # Hoist the weight cast out of the per-call path (one-time bf16 copy).
    w_bf = w.astype(jnp.bfloat16)

    out = generator_forward(x, w_bf, b)
    jax.block_until_ready(out)

    # Sanity check against pure-JAX f32 reference (tolerance loosened for the
    # bf16 matmul operands; softmax/accumulation stay f32).
    ref = jax.nn.log_softmax(jnp.einsum("bsd,dv->bsv", x, w) + b, axis=-1)
    assert out.shape == (batch, seq, vocab)
    assert bool(jnp.allclose(out, ref, atol=7e-2, rtol=7e-2))

    print("KERNEL_OK")
</pallas_src>

<mosaic_0001>
module attributes {stable_mosaic.version = 11 : i64} {
  func.func @_generator_kernel(%arg0: i32, %arg1: i32, %arg2: memref<16x32xbf16, #tpu.memory_space<vmem>>, %arg3: memref<32x128xbf16, #tpu.memory_space<vmem>>, %arg4: memref<1x128xf32, #tpu.memory_space<vmem>>, %arg5: memref<16x128xf32, #tpu.memory_space<vmem>>, %arg6: memref<16x1xf32, #tpu.memory_space<vmem>>, %arg7: memref<16x1xf32, #tpu.memory_space<vmem>>) attributes {dimension_semantics = [#tpu.dimension_semantics<parallel>, #tpu.dimension_semantics<arbitrary>], iteration_bounds = array<i64: 1, 1>, scalar_prefetch = 0 : i64, scratch_operands = 2 : i64, tpu.core_type = #tpu.core_type<tc>, window_params = [{transform_indices = @transform_0, window_bounds = array<i64: 16, 32>}, {transform_indices = @transform_1, window_bounds = array<i64: 32, 128>}, {pipeline_mode = #tpu.pipeline_mode<synchronous>, transform_indices = @transform_2, window_bounds = array<i64: 1, 128>}, {transform_indices = @transform_3, window_bounds = array<i64: 16, 128>}]} {
    %c0_i32 = arith.constant 0 : i32
    %0 = arith.cmpi eq, %arg1, %c0_i32 : i32
    %1 = arith.extui %0 : i1 to i32
    %c0_i32_0 = arith.constant 0 : i32
    %2 = arith.cmpi ne, %1, %c0_i32_0 : i32
    scf.if %2 {
      %cst_18 = arith.constant 0xFF800000 : f32
      %33 = vector.broadcast %cst_18 : f32 to vector<16x1xf32>
      %c0_19 = arith.constant 0 : index
      %c0_20 = arith.constant 0 : index
      %34 = vector.load %arg6[%c0_19, %c0_20] : memref<16x1xf32, #tpu.memory_space<vmem>>, vector<16x1xf32>
      tpu.vector_store %arg6[%c0_19, %c0_20], %33 {strides = array<i32>} : memref<16x1xf32, #tpu.memory_space<vmem>>, vector<16x1xf32>,
      %cst_21 = arith.constant 0.000000e+00 : f32
      %35 = vector.broadcast %cst_21 : f32 to vector<16x1xf32>
      %c0_22 = arith.constant 0 : index
      %c0_23 = arith.constant 0 : index
      %36 = vector.load %arg7[%c0_22, %c0_23] : memref<16x1xf32, #tpu.memory_space<vmem>>, vector<16x1xf32>
      tpu.vector_store %arg7[%c0_22, %c0_23], %35 {strides = array<i32>} : memref<16x1xf32, #tpu.memory_space<vmem>>, vector<16x1xf32>,
    } else {
    }
    %c128_i32 = arith.constant 128 : i32
    %3 = arith.muli %arg1, %c128_i32 : i32
    %4 = tpu.assume_multiple %3, 128 : i32
    %c0 = arith.constant 0 : index
    %c0_1 = arith.constant 0 : index
    %5 = vector.load %arg2[%c0, %c0_1] : memref<16x32xbf16, #tpu.memory_space<vmem>>, vector<16x32xbf16>
    %c0_2 = arith.constant 0 : index
    %c0_3 = arith.constant 0 : index
    %6 = vector.load %arg3[%c0_2, %c0_3] : memref<32x128xbf16, #tpu.memory_space<vmem>>, vector<32x128xbf16>
    %cst = arith.constant dense<0.000000e+00> : vector<16x128xf32>
    %7 = tpu.matmul %5, %6, %cst {dimension_numbers = #tpu.dot_dimension_numbers<[1], [0], [0], [1], [0, 0, 1, 1], [], []>} : vector<16x32xbf16>, vector<32x128xbf16>, vector<16x128xf32> -> vector<16x128xf32>
    %c0_4 = arith.constant 0 : index
    %8 = arith.index_cast %4 : i32 to index
    %9 = vector.load %arg4[%c0_4, %8] : memref<1x128xf32, #tpu.memory_space<vmem>>, vector<1x128xf32>
    %10 = vector.broadcast %9 : vector<1x128xf32> to vector<16x128xf32>
    %11 = arith.addf %7, %10 : vector<16x128xf32>
    %c0_5 = arith.constant 0 : index
    %12 = arith.index_cast %4 : i32 to index
    %13 = vector.load %arg5[%c0_5, %12] : memref<16x128xf32, #tpu.memory_space<vmem>>, vector<16x128xf32>
    tpu.vector_store %arg5[%c0_5, %12], %11 {strides = array<i32>} : memref<16x128xf32, #tpu.memory_space<vmem>>, vector<16x128xf32>,
    %c0_6 = arith.constant 0 : index
    %c0_7 = arith.constant 0 : index
    %14 = vector.load %arg6[%c0_6, %c0_7] : memref<16x1xf32, #tpu.memory_space<vmem>>, vector<16x1xf32>
    %cst_8 = arith.constant dense<0xFF800000> : vector<16xf32>
    %15 = vector.multi_reduction <maximumf>, %11, %cst_8 [1] : vector<16x128xf32> to vector<16xf32>
    %16 = vector.shape_cast %15 : vector<16xf32> to vector<16x1xf32>
    %17 = arith.maximumf %14, %16 : vector<16x1xf32>
    %c0_9 = arith.constant 0 : index
    %c0_10 = arith.constant 0 : index
    %18 = vector.load %arg7[%c0_9, %c0_10] : memref<16x1xf32, #tpu.memory_space<vmem>>, vector<16x1xf32>
    %19 = arith.subf %14, %17 : vector<16x1xf32>
    %20 = math.exp %19 : vector<16x1xf32>
    %21 = arith.mulf %18, %20 : vector<16x1xf32>
    %22 = vector.broadcast %17 : vector<16x1xf32> to vector<16x128xf32>
    %23 = arith.subf %11, %22 : vector<16x128xf32>
    %24 = math.exp %23 : vector<16x128xf32>
    %cst_11 = arith.constant dense<0.000000e+00> : vector<16xf32>
    %25 = vector.multi_reduction <add>, %24, %cst_11 [1] : vector<16x128xf32> to vector<16xf32>
    %26 = vector.shape_cast %25 : vector<16xf32> to vector<16x1xf32>
    %27 = arith.addf %21, %26 : vector<16x1xf32>
    %c0_12 = arith.constant 0 : index
    %c0_13 = arith.constant 0 : index
    %28 = vector.load %arg7[%c0_12, %c0_13] : memref<16x1xf32, #tpu.memory_space<vmem>>, vector<16x1xf32>
    tpu.vector_store %arg7[%c0_12, %c0_13], %27 {strides = array<i32>} : memref<16x1xf32, #tpu.memory_space<vmem>>, vector<16x1xf32>,
    %c0_14 = arith.constant 0 : index
    %c0_15 = arith.constant 0 : index
    %29 = vector.load %arg6[%c0_14, %c0_15] : memref<16x1xf32, #tpu.memory_space<vmem>>, vector<16x1xf32>
    tpu.vector_store %arg6[%c0_14, %c0_15], %17 {strides = array<i32>} : memref<16x1xf32, #tpu.memory_space<vmem>>, vector<16x1xf32>,
    %c0_i32_16 = arith.constant 0 : i32
    %30 = arith.cmpi eq, %arg1, %c0_i32_16 : i32
    %31 = arith.extui %30 : i1 to i32
    %c0_i32_17 = arith.constant 0 : i32
    %32 = arith.cmpi ne, %31, %c0_i32_17 : i32
    scf.if %32 {
      %c0_18 = arith.constant 0 : index
      %c0_19 = arith.constant 0 : index
      %33 = vector.load %arg6[%c0_18, %c0_19] : memref<16x1xf32, #tpu.memory_space<vmem>>, vector<16x1xf32>
      %c0_20 = arith.constant 0 : index
      %c0_21 = arith.constant 0 : index
      %34 = vector.load %arg7[%c0_20, %c0_21] : memref<16x1xf32, #tpu.memory_space<vmem>>, vector<16x1xf32>
      %35 = math.log %34 : vector<16x1xf32>
      %36 = arith.addf %33, %35 : vector<16x1xf32>
      %c0_22 = arith.constant 0 : index
      %c0_23 = arith.constant 0 : index
      %37 = vector.load %arg5[%c0_22, %c0_23] : memref<16x128xf32, #tpu.memory_space<vmem>>, vector<16x128xf32>
      %38 = vector.broadcast %36 : vector<16x1xf32> to vector<16x128xf32>
      %39 = arith.subf %37, %38 : vector<16x128xf32>
      %c0_24 = arith.constant 0 : index
      %c0_25 = arith.constant 0 : index
      %40 = vector.load %arg5[%c0_24, %c0_25] : memref<16x128xf32, #tpu.memory_space<vmem>>, vector<16x128xf32>
      tpu.vector_store %arg5[%c0_24, %c0_25], %39 {strides = array<i32>} : memref<16x128xf32, #tpu.memory_space<vmem>>, vector<16x128xf32>,
    } else {
    }
    return
  }
  func.func @transform_0(%arg0: i32, %arg1: i32) -> (i32, i32) {
    %c0_i32 = arith.constant 0 : i32
    %c0_i32_0 = arith.constant 0 : i32
    return %arg0, %c0_i32 : i32, i32
  }
  func.func @transform_1(%arg0: i32, %arg1: i32) -> (i32, i32) {
    %c0_i32 = arith.constant 0 : i32
    %c0_i32_0 = arith.constant 0 : i32
    return %c0_i32, %arg1 : i32, i32
  }
  func.func @transform_2(%arg0: i32, %arg1: i32) -> (i32, i32) {
    %c0_i32 = arith.constant 0 : i32
    %c0_i32_0 = arith.constant 0 : i32
    %c0_i32_1 = arith.constant 0 : i32
    return %c0_i32, %c0_i32_0 : i32, i32
  }
  func.func @transform_3(%arg0: i32, %arg1: i32) -> (i32, i32) {
    %c0_i32 = arith.constant 0 : i32
    %c0_i32_0 = arith.constant 0 : i32
    return %arg0, %c0_i32 : i32, i32
  }
}

</mosaic_0001>

<bundles_post_ra>
// kernel: tpu_custom_call.1
= control target key start
LH: loop header
LB: loop body
LE: loop exit
PB: predicated region body
PF: predicated region fallthrough
CT: control target
= control target key end

     0   :  { %8 = vsyncpa [#allocation5], 0  ;;  %s400_s0 = inlined_call_operand.hbm [shape: bf16[16,32], index: 0, kind: input, shape index: {}]   ;;  %s401_s1 = inlined_call_operand.hbm [shape: bf16[32,128], index: 1, kind: input, shape index: {}]   ;;  %s402_s2 = inlined_call_operand.vmem [shape: f32[1,128], index: 2, kind: input, shape index: {}]   ;;  %s403_s3 = inlined_call_operand.hbm [shape: f32[16,128], index: 3, kind: output, shape index: {}]  }
   0x1   :  { %9 = vsyncpa [#allocation8], 0 }
   0x2   :  { %10 = vsyncpa [#allocation6], 0  ;;  %s339_s12 = smov [#allocation4]  }
   0x3   :  { %s16_s13 = sshll.u32 %s339_s12, 4  ;;  %s17_s13 = int_to_ptr.vmem [resolvable:$true] %s16_s13 }
   0x4   :  { %s281_s14 = scalar_lea.vmem %s17_s13, 128  ;;  %p286_p1 = scmp.lt.s32.totalorder %s17_s13, %s17_s13 }
   0x5   :  { %p282_p0 = scmp.ne.s32.totalorder %s17_s13, %s281_s14  ;;  %p287_p2 = scmp.lt.s32.totalorder %s281_s14, %s281_s14 }
   0x7   :  { %p288_p3 = por %p287_p2, %p286_p1 }
   0x9   :  { %p289_p4 = pnand %p288_p3, %p282_p0 }
   0xb   :  { %292 = shalt.err (!%p289_p4)
}
   0xc   :  { %s340_s15 = smov 64   ;;  %s341_s16 = smov 4  }
   0xd   :  { %22 = dma.hbm_to_vmem [thread:$0]  %s400_s0, 128, %s17_s13, [#allocation5], %s340_s15, %s340_s15, %s341_s16  }
   0xe   :  { %s342_s19 = smov [#allocation7]  }
   0xf   :  { %s28_s20 = sshll.u32 %s342_s19, 4  ;;  %s29_s20 = int_to_ptr.vmem [resolvable:$true] %s28_s20 }
  0x10   :  { %s301_s21 = scalar_lea.vmem %s29_s20, 256  ;;  %p306_p6 = scmp.lt.s32.totalorder %s29_s20, %s29_s20 }
  0x11   :  { %p302_p5 = scmp.ne.s32.totalorder %s29_s20, %s301_s21  ;;  %p307_p7 = scmp.lt.s32.totalorder %s301_s21, %s301_s21 }
  0x13   :  { %p308_p8 = por %p307_p7, %p306_p6 }
  0x15   :  { %p309_p9 = pnand %p308_p8, %p302_p5 }
  0x17   :  { %312 = shalt.err (!%p309_p9)
}
  0x18   :  { %34 = dma.hbm_to_vmem [thread:$0]  %s401_s1, 256, %s29_s20, [#allocation8], %s340_s15, %s340_s15, %s341_s16  }
  0x19   :  { %333 = dma.done.wait [#allocation5], 128  }
  0x1a   :  { %334 = vsyncadd [#allocation5], 4294967168 }
  0x1b   :  { %335 = dma.done.wait [#allocation8], 256  }
  0x1c   :  { %336 = vsyncadd [#allocation8], 4294967040  ;;  %vm48_vm0 = vcmask 7168   ;;  %v343_v0 = vmov 0.0   ;;  %vm344_vm1 = vmmov 0   ;;  %v258_v1 = vld [vmem:[#allocation7 + $0x8] sm:$0xff]  }
  0x1d   :  { %51 = vst.msk [vmem:[#allocation3] sm:$0xff] %vm48_vm0, %v343_v0  ;;  %52 = vst.msk [vmem:[#allocation3 + $0x8] sm:$0xff] %vm48_vm0, %v343_v0  ;;  %237 = vmatprep.subr.bf16.mxu0 %v343_v0  ;;  %241 = vmatprep.mubr.msk.bf16.mxu0 %vm344_vm1, %v343_v0  ;;  %v259_v2 = vld [vmem:[#allocation7] sm:$0xff]   ;;  %v260_v3 = vld [vmem:[#allocation4] sm:$0xff]   ;;  %vm87_vm2 = vcmask 261120   ;;  %v345_v4 = vmov -inf  }
  0x1e   :  { %238 = vmatpush3.bf16.msra.mxu0 %v258_v1  ;;  %49 = vst.msk [vmem:[#allocation2] sm:$0xff] %vm48_vm0, %v345_v4  ;;  %50 = vst.msk [vmem:[#allocation2 + $0x8] sm:$0xff] %vm48_vm0, %v345_v4  ;;  %v229_v5 = vld [vmem:[%s402_s2] ss:$0 sm:$0xff]  ;;  %v346_v12 = vmov 0   ;;  %s347_s2 = smov [#allocation9]  }
  0x1f   :  { %239 = vmatprep.subr.bf16.mxu0 %v343_v0  ;;  %256 = vset.pattern.permute.xlu1 %v346_v12  ;;  %s214_s24 = sshll.u32 %s347_s2, 4  ;;  %s215_s24 = int_to_ptr.vmem [resolvable:$true] %s214_s24 }
  0x20   :  { %257 = vset.pattern.permute.xlu0 %v346_v12  ;;  %s313_s25 = scalar_lea.vmem %s215_s24, 256  ;;  %p318_p11 = scmp.lt.s32.totalorder %s215_s24, %s215_s24 }
  0x21   :  { %p314_p10 = scmp.ne.s32.totalorder %s215_s24, %s313_s25  ;;  %p319_p12 = scmp.lt.s32.totalorder %s313_s25, %s313_s25 }
  0x22   :  { %240 = vmatpush3.bf16.msra.mxu0 %v259_v2 }
  0x23   :  { %p320_p13 = por %p319_p12, %p318_p11 }
  0x24   :  { %v143_v32 = vld [vmem:[#allocation3] sm:$0xff]  ;;  %v144_v36 = vld [vmem:[#allocation3 + $0x8] sm:$0xff] }
  0x25   :  { %242 = vmatmul.mubr.msk.bf16.vlgmr.msra.gmra.mxu0 %vm87_vm2, %v260_v3  ;;  %v135_v13 = vld [vmem:[#allocation2] sm:$0xff]  ;;  %v136_v16 = vld [vmem:[#allocation2 + $0x8] sm:$0xff]  ;;  %p321_p0 = pnand %p320_p13, %p314_p10 }
  0xe5   :  { %v125_v6 = vpop.f32.mrf.mxu0 }
  0xe6   :  { %v383_v7 = vadd.f32 %v229_v5, %v125_v6 }
  0xe7   :  { %v243_v8 = vpop.f32.mrf.mxu0 }
  0xe8   :  { %137 = vmax.xlane.f32.xlu0 %v383_v7 }
  0xe9   :  { %v128_v9 = vpop.f32.mrf.mxu0 }
  0xea   :  { %v386_v10 = vadd.f32 %v229_v5, %v128_v9 }
  0xeb   :  { %v244_v11 = vpop.f32.mrf.mxu0 }
  0xec   :  { %139 = vmax.xlane.f32.xlu0 %v386_v10 }
 0x171   :  { %v138_v14 = vpop.xlane.xlu0 %137 }
 0x172   :  { %v141_v15 = vmax.f32 %v135_v13, %v138_v14 }
 0x174   :  { %v145_v17 = vsub.f32 %v135_v13, %v141_v15  ;;  %178 = vst.msk [vmem:[#allocation2] sm:$0xff] %vm48_vm0, %v141_v15  ;;  %155 = vperm.xlu1 %256, %v141_v15  }
 0x175   :  { %v140_v18 = vpop.xlane.xlu0 %139 }
 0x176   :  { %v142_v19 = vmax.f32 %v136_v16, %v140_v18  ;;  %v147_v29 = vmul.f32 1.442695, %v145_v17 }
 0x178   :  { %v146_v20 = vsub.f32 %v136_v16, %v142_v19  ;;  %179 = vst.msk [vmem:[#allocation2 + $0x8] sm:$0xff] %vm48_vm0, %v142_v19  ;;  %160 = vperm.xlu1 %256, %v142_v19  }
 0x17a   :  { %v149_v30 = vmul.f32 1.442695, %v146_v20 }
 0x17b   :  { %v183_v45 = vld [vmem:[#allocation2] sm:$0xff] }
 0x17f   :  { %v184_v49 = vld [vmem:[#allocation2 + $0x8] sm:$0xff] }
 0x1ef   :  { %v156_v21 = vpop.permute.xlu1 %155 }
 0x1f0   :  { %v163_v22 = vsub.f32 %v383_v7, %v156_v21 }
 0x1f2   :  { %v165_v23 = vmul.f32 1.442695, %v163_v22 }
 0x1f3   :  { %v161_v24 = vpop.permute.xlu1 %160 }
 0x1f4   :  { %261 = vpow2.f32 %v165_v23  ;;  %v164_v25 = vsub.f32 %v386_v10, %v161_v24 }
 0x1f6   :  { %v167_v26 = vmul.f32 1.442695, %v164_v25 }
 0x1f8   :  { %263 = vpow2.f32 %v167_v26 }
 0x1f9   :  { %265 = vpow2.f32 %v147_v29 }
 0x1fa   :  { %267 = vpow2.f32 %v149_v30 }
 0x201   :  { %v262_v27 = vpop.eup %261 }
 0x202   :  { %169 = vadd.xlane.f32.xlu0 %v262_v27 }
 0x205   :  { %v264_v28 = vpop.eup %263 }
 0x206   :  { %171 = vadd.xlane.f32.xlu1 %v264_v28  ;;  %v266_v31 = vpop.eup %265 }
 0x207   :  { %v151_v33 = vmul.f32 %v266_v31, %v143_v32  ;;  %v268_v34 = vpop.eup %267 }
 0x208   :  { %v152_v38 = vmul.f32 %v268_v34, %v144_v36 }
 0x28b   :  { %v170_v35 = vpop.xlane.xlu0 %169 }
 0x28c   :  { %v173_v37 = vadd.f32 %v170_v35, %v151_v33 }
 0x28e   :  { %176 = vst.msk [vmem:[#allocation3] sm:$0xff] %vm48_vm0, %v173_v37 }
 0x28f   :  { %v172_v39 = vpop.xlane.xlu1 %171 }
 0x290   :  { %v174_v40 = vadd.f32 %v172_v39, %v152_v38 }
 0x292   :  { %177 = vst.msk [vmem:[#allocation3 + $0x8] sm:$0xff] %vm48_vm0, %v174_v40 }
 0x295   :  { %v185_v41 = vld [vmem:[#allocation3] sm:$0xff] }
 0x296   :  { %269 = vlog2.f32 %v185_v41 }
 0x299   :  { %v186_v42 = vld [vmem:[#allocation3 + $0x8] sm:$0xff] }
 0x29a   :  { %271 = vlog2.f32 %v186_v42 }
 0x2a3   :  { %v270_v43 = vpop.eup %269 }
 0x2a4   :  { %v188_v44 = vmul.f32 0.6931472, %v270_v43 }
 0x2a6   :  { %v191_v46 = vadd.f32 %v188_v44, %v183_v45 }
 0x2a7   :  { %v272_v47 = vpop.eup %271 }
 0x2a8   :  { %197 = vperm.xlu0 %257, %v191_v46   ;;  %v190_v48 = vmul.f32 0.6931472, %v272_v47 }
 0x2aa   :  { %v192_v50 = vadd.f32 %v190_v48, %v184_v49 }
 0x2ac   :  { %202 = vperm.xlu1 %256, %v192_v50  }
 0x323   :  { %v198_v51 = vpop.permute.xlu0 %197 }
 0x324   :  { %v205_v52 = vsub.f32 %v383_v7, %v198_v51 }
 0x326   :  { %207 = vst [vmem:[#allocation9] sm:$0xff] %v205_v52 }
 0x327   :  { %v203_v53 = vpop.permute.xlu1 %202 }
 0x328   :  { %v206_v54 = vsub.f32 %v386_v10, %v203_v53 }
 0x32a   :  { %208 = vst [vmem:[#allocation9 + $0x8] sm:$0xff] %v206_v54 }
 0x32b   :  { %324 = shalt.err (!%p321_p0)
}
 0x32c   :  { %s348_s26 = smov 128   ;;  %s349_s27 = smov 8  }
 0x32d   :  { %220 = dma.vmem_to_hbm [thread:$0]  %s215_s24, 256, %s403_s3, [#allocation6], %s348_s26, %s348_s26, %s349_s27  }
 0x32e   :  { %337 = dma.done.wait [#allocation6], 256  }
 0x32f   :  { %338 = vsyncadd [#allocation6], 4294967040 }
 0x330   :  { %224 = vsyncpa [#allocation5], 1 }
 0x331   :  { %225 = vsyncpa [#allocation8], 1 }
 0x332   :  { %226 = vsyncpa [#allocation6], 1 }

</bundles_post_ra>
